<compile_context>
chip_gen: v6e
topology: v6e:2x2x1
jax: 0.10.0
libtpu: 0.0.40
codegen_flags: <defaults>
</compile_context>

<pallas_src>
import jax
import jax.numpy as jnp
from jax.experimental import pallas as pl
from jax.experimental.pallas import tpu as pltpu


def _cdiv(a, b):
    return -(-a // b)


def _round_up(n, m):
    return _cdiv(n, m) * m


def _tpu_generation():
    """Best-effort TPU generation (7 for v7x, 6 for v6e, 5 for v5e/v5p, ...)."""
    try:
        kind = jax.devices()[0].device_kind.lower()
    except Exception:
        return 0
    if "v7" in kind or "7x" in kind:
        return 7
    for g in (6, 5, 4, 3, 2):
        if "v%d" % g in kind:
            return g
    return 0


def _chip_config():
    gen = _tpu_generation()
    return dict(
        pack=4 if gen >= 6 else 2,            # 256-wide MXU on v6e/v7x
        bf16_vpu=gen >= 6,                    # native bf16 VALU
        min_grid=2 if gen >= 7 else 1,        # v7x: 2 TensorCores share the grid
        tile_budget=(20 << 20) if gen >= 7 else (40 << 20),  # v7x: 64 MiB VMEM/TC
        block_b_cap=8192 if gen >= 7 else 16384,
    )


# --------------------------------------------------------------------------- #
# One-time parameter packing (hoisted out of the forward path).
# --------------------------------------------------------------------------- #
def pack_feature_net_params(params, *, compute_dtype=jnp.bfloat16, pack=None,
                            act_dtype=None):
    """Pack feature_net params for the Pallas kernel (call ONCE, cache result).

    params:        dict of w1,b1,w2,b2,w3,b3; wN is (in_features, out_features),
                   bN is (1, out_features) or (out_features,).
    compute_dtype: dtype fed to the MXU (accumulation is always f32). Use
                   jnp.float32 for exact parity with the PyTorch forward.
    pack:          batch rows interleaved into the lane axis (auto: 4 on
                   v6e/v7x, 2 on v5e/unknown).
    act_dtype:     dtype of the inter-layer bias-add / ReLU (auto: bf16 on
                   chips with a bf16 VPU when compute_dtype is bf16, else f32).

    Returns (packed_arrays_dict, meta_dict).
    """
    cfg = _chip_config()
    cdt = jnp.dtype(compute_dtype)
    D, H = params["w1"].shape

    if pack is None:
        pack = cfg["pack"]
    while pack > 1 and pack * H > 512:
        pack //= 2
    pack = max(1, int(pack))

    if act_dtype is None:
        adt = (jnp.dtype(jnp.bfloat16)
               if (cfg["bf16_vpu"] and cdt == jnp.dtype(jnp.bfloat16))
               else jnp.dtype(jnp.float32))
    else:
        adt = jnp.dtype(act_dtype)
    if cdt == jnp.dtype(jnp.float32):
        adt = jnp.dtype(jnp.float32)  # keep the exact path exact

    eye = jnp.eye(pack, dtype=cdt)

    def blkdiag(w):  # [[W 0 ..], [0 W ..], ...] — exact copies + exact zeros
        return jnp.kron(eye, w.astype(cdt))

    def tile_bias(b):
        b = jnp.asarray(b).reshape(1, -1).astype(adt)
        return jnp.tile(b, (1, pack))

    packed = {
        "w1": blkdiag(params["w1"]), "b1": tile_bias(params["b1"]),
        "w2": blkdiag(params["w2"]), "b2": tile_bias(params["b2"]),
        "w3": blkdiag(params["w3"]), "b3": tile_bias(params["b3"]),
    }
    meta = dict(pack=pack, obs_dim=int(D), hidden=int(H),
                compute_dtype=cdt, act_dtype=adt)
    return packed, meta


# --------------------------------------------------------------------------- #
# Kernel
# --------------------------------------------------------------------------- #
def _feature_net_kernel(x_ref, w1_ref, b1_ref, w2_ref, b2_ref, w3_ref, b3_ref,
                        o_ref):
    cdt = w1_ref.dtype   # MXU input dtype
    adt = b1_ref.dtype   # bias-add / ReLU dtype (bf16 on v6e/v7x fast path)
    # fc1 + relu  (f32 MXU accumulation; in-kernel cast of the f32 x tile)
    h = jnp.dot(x_ref[...].astype(cdt), w1_ref[...],
                preferred_element_type=jnp.float32)
    h = jnp.maximum(h.astype(adt) + b1_ref[...], 0).astype(cdt)
    # fc2 + relu
    h = jnp.dot(h, w2_ref[...], preferred_element_type=jnp.float32)
    h = jnp.maximum(h.astype(adt) + b2_ref[...], 0).astype(cdt)
    # fc3 + relu
    h = jnp.dot(h, w3_ref[...], preferred_element_type=jnp.float32)
    h = jnp.maximum(h.astype(adt) + b3_ref[...], 0)
    o_ref[...] = h.astype(o_ref.dtype)


# --------------------------------------------------------------------------- #
# Forward wrapper
# --------------------------------------------------------------------------- #
def feature_net_forward(x, packed, meta, *, out_dtype=None, block_b=None):
    """x: (B, obs_dim) float32.  packed/meta: from pack_feature_net_params.

    out_dtype: default bfloat16 when compute_dtype is bfloat16 (the output is
               the dominant HBM stream), else x.dtype.
    """
    B, D = x.shape
    pack = meta["pack"]
    H = meta["hidden"]
    assert D == meta["obs_dim"], "x feature dim does not match packed params"
    cdt = meta["compute_dtype"]
    adt = meta["act_dtype"]
    cfg = _chip_config()

    if out_dtype is None:
        odt = (jnp.dtype(jnp.bfloat16) if cdt == jnp.dtype(jnp.bfloat16)
               else jnp.dtype(x.dtype))
    else:
        odt = jnp.dtype(out_dtype)

    Dp, Hp = pack * D, pack * H
    row_align = 16 * pack  # packed tile rows stay a multiple of 16

    # ---- batch tile selection ----------------------------------------------
    x_bytes = jnp.dtype(x.dtype).itemsize
    o_bytes = odt.itemsize
    a_bytes = adt.itemsize
    # per ORIGINAL row: double-buffered x + out tiles, plus per-layer scratch
    bytes_per_row = 2 * D * x_bytes + 2 * H * o_bytes + 2 * H * 4 + H * a_bytes
    if block_b is None:
        block_b_max = min(cfg["block_b_cap"],
                          max(row_align,
                              cfg["tile_budget"] // max(bytes_per_row, 1)))
        block_b_max = max(row_align, (block_b_max // row_align) * row_align)
        # minimize zero-padding; keep >=2 grid steps on v7x (2 TensorCores)
        n_tiles = _cdiv(B, block_b_max)
        if B >= 2 * row_align:
            n_tiles = max(n_tiles, cfg["min_grid"])
        block_b = _round_up(_cdiv(B, n_tiles), row_align)
    else:
        block_b = _round_up(max(block_b, row_align), row_align)

    B_pad = _round_up(B, block_b)
    grid = (B_pad // block_b,)
    block_bp = block_b // pack

    # ---- lane-pack rows: (B, D) -> (B/pack, pack*D), free row-major reshape -
    xp = x if B_pad == B else jnp.pad(x, ((0, B_pad - B), (0, 0)))
    xp = xp.reshape(B_pad // pack, Dp)

    # ---- explicit VMEM sizing (double buffers + weights + headroom) --------
    tile_bytes = 2 * block_bp * (Dp * x_bytes + Hp * o_bytes)
    tile_bytes += block_bp * Hp * (2 * 4 + a_bytes)  # per-layer intermediates
    weight_bytes = 2 * sum(int(v.size) * v.dtype.itemsize
                           for v in packed.values())
    vmem_limit = int(tile_bytes + weight_bytes + (8 << 20))

    def xmap(i):
        return (i, 0)

    def wmap(i):
        return (0, 0)

    in_specs = [
        pl.BlockSpec((block_bp, Dp), xmap),     # packed x tile (f32 in HBM)
        pl.BlockSpec(packed["w1"].shape, wmap),
        pl.BlockSpec(packed["b1"].shape, wmap),
        pl.BlockSpec(packed["w2"].shape, wmap),
        pl.BlockSpec(packed["b2"].shape, wmap),
        pl.BlockSpec(packed["w3"].shape, wmap),
        pl.BlockSpec(packed["b3"].shape, wmap),
    ]
    out_specs = pl.BlockSpec((block_bp, Hp), xmap)  # lane-dense (..., 128k) slab

    out_p = pl.pallas_call(
        _feature_net_kernel,
        out_shape=jax.ShapeDtypeStruct((B_pad // pack, Hp), odt),
        grid_spec=pltpu.PrefetchScalarGridSpec(
            num_scalar_prefetch=0,
            grid=grid,
            in_specs=in_specs,
            out_specs=out_specs,
        ),
        compiler_params=pltpu.CompilerParams(
            dimension_semantics=("parallel",),
            vmem_limit_bytes=vmem_limit,
        ),
    )(xp, packed["w1"], packed["b1"], packed["w2"], packed["b2"],
      packed["w3"], packed["b3"])

    out = out_p.reshape(B_pad, H)   # free: byte-identical row-major reshape
    if B_pad != B:
        out = out[:B]
    return out


# --------------------------------------------------------------------------- #
# Init + reference + self-test
# --------------------------------------------------------------------------- #
def init_feature_net_params(key, obs_dim, hidden=64):
    """Deterministic init mimicking nn.Linear default (U[-1/sqrt(fan_in), +])."""
    keys = jax.random.split(key, 6)

    def linear(kw, kb, fan_in, fan_out):
        bound = 1.0 / jnp.sqrt(jnp.float32(fan_in))
        w = jax.random.uniform(kw, (fan_in, fan_out), jnp.float32,
                               minval=-bound, maxval=bound)
        b = jax.random.uniform(kb, (1, fan_out), jnp.float32,
                               minval=-bound, maxval=bound)
        return w, b

    w1, b1 = linear(keys[0], keys[1], obs_dim, hidden)
    w2, b2 = linear(keys[2], keys[3], hidden, hidden)
    w3, b3 = linear(keys[4], keys[5], hidden, hidden)
    return {"w1": w1, "b1": b1, "w2": w2, "b2": b2, "w3": w3, "b3": b3}


def _reference(x, p):
    h = jax.nn.relu(x @ p["w1"] + p["b1"])
    h = jax.nn.relu(h @ p["w2"] + p["b2"])
    h = jax.nn.relu(h @ p["w3"] + p["b3"])
    return h


if __name__ == "__main__":
    key = jax.random.PRNGKey(0)
    k_x, k_p, k_x2 = jax.random.split(key, 3)

    batch = 8        # small batch of observations
    obs_dim = 32     # args.obs_shape[agent_id]
    hidden = 64

    x = jax.random.normal(k_x, (batch, obs_dim), dtype=jnp.float32)
    params = init_feature_net_params(k_p, obs_dim, hidden)
    ref = _reference(x, params)

    # exact path (f32 MXU / f32 activations) — matches the PyTorch forward tightly
    packed_f32, meta_f32 = pack_feature_net_params(params,
                                                   compute_dtype=jnp.float32)
    out_f32 = jax.block_until_ready(feature_net_forward(x, packed_f32, meta_f32))
    assert out_f32.shape == (batch, hidden)
    assert out_f32.dtype == jnp.float32
    assert jnp.allclose(out_f32, ref, atol=1e-5, rtol=1e-5), "f32 mismatch vs reference"

    # default fast path (bf16 MXU inputs / activations, f32 acc, bf16 output)
    packed_bf, meta_bf = pack_feature_net_params(params)  # bf16 by default
    out_bf = jax.block_until_ready(feature_net_forward(x, packed_bf, meta_bf))
    assert out_bf.shape == (batch, hidden)
    assert jnp.allclose(out_bf.astype(jnp.float32), ref, atol=1e-1, rtol=1e-1), \
        "bf16 mismatch vs reference"

    # padded, multi-tile path (odd batch / obs_dim, forced small tile, exact compute)
    batch2, obs_dim2 = 200, 24
    x2 = jax.random.normal(k_x2, (batch2, obs_dim2), dtype=jnp.float32)
    params2 = init_feature_net_params(jax.random.PRNGKey(1), obs_dim2, hidden)
    packed2, meta2 = pack_feature_net_params(params2, compute_dtype=jnp.float32)
    out2 = jax.block_until_ready(
        feature_net_forward(x2, packed2, meta2, block_b=64))
    assert out2.shape == (batch2, hidden)
    assert jnp.allclose(out2, _reference(x2, params2), atol=1e-5, rtol=1e-5), \
        "padded multi-tile mismatch vs reference"

    print("KERNEL_OK")
</pallas_src>

<mosaic_0001>
module attributes {stable_mosaic.version = 11 : i64} {
  func.func @_feature_net_kernel(%arg0: i32, %arg1: memref<16x64xf32, #tpu.memory_space<vmem>>, %arg2: memref<64x128xf32, #tpu.memory_space<vmem>>, %arg3: memref<1x128xf32, #tpu.memory_space<vmem>>, %arg4: memref<128x128xf32, #tpu.memory_space<vmem>>, %arg5: memref<1x128xf32, #tpu.memory_space<vmem>>, %arg6: memref<128x128xf32, #tpu.memory_space<vmem>>, %arg7: memref<1x128xf32, #tpu.memory_space<vmem>>, %arg8: memref<16x128xf32, #tpu.memory_space<vmem>>) attributes {dimension_semantics = [#tpu.dimension_semantics<parallel>], iteration_bounds = array<i64: 1>, scalar_prefetch = 0 : i64, scratch_operands = 0 : i64, tpu.core_type = #tpu.core_type<tc>, window_params = [{transform_indices = @transform_0, window_bounds = array<i64: 16, 64>}, {pipeline_mode = #tpu.pipeline_mode<synchronous>, transform_indices = @transform_1, window_bounds = array<i64: 64, 128>}, {pipeline_mode = #tpu.pipeline_mode<synchronous>, transform_indices = @transform_2, window_bounds = array<i64: 1, 128>}, {pipeline_mode = #tpu.pipeline_mode<synchronous>, transform_indices = @transform_3, window_bounds = array<i64: 128, 128>}, {pipeline_mode = #tpu.pipeline_mode<synchronous>, transform_indices = @transform_4, window_bounds = array<i64: 1, 128>}, {pipeline_mode = #tpu.pipeline_mode<synchronous>, transform_indices = @transform_5, window_bounds = array<i64: 128, 128>}, {pipeline_mode = #tpu.pipeline_mode<synchronous>, transform_indices = @transform_6, window_bounds = array<i64: 1, 128>}, {transform_indices = @transform_7, window_bounds = array<i64: 16, 128>}]} {
    %c0 = arith.constant 0 : index
    %c0_0 = arith.constant 0 : index
    %0 = vector.load %arg1[%c0, %c0_0] : memref<16x64xf32, #tpu.memory_space<vmem>>, vector<16x64xf32>
    %c0_1 = arith.constant 0 : index
    %c0_2 = arith.constant 0 : index
    %1 = vector.load %arg2[%c0_1, %c0_2] : memref<64x128xf32, #tpu.memory_space<vmem>>, vector<64x128xf32>
    %cst = arith.constant dense<0.000000e+00> : vector<16x128xf32>
    %2 = tpu.matmul %0, %1, %cst {dimension_numbers = #tpu.dot_dimension_numbers<[1], [0], [0], [1], [0, 0, 1, 1], [], []>} : vector<16x64xf32>, vector<64x128xf32>, vector<16x128xf32> -> vector<16x128xf32>
    %c0_3 = arith.constant 0 : index
    %c0_4 = arith.constant 0 : index
    %3 = vector.load %arg3[%c0_3, %c0_4] : memref<1x128xf32, #tpu.memory_space<vmem>>, vector<1x128xf32>
    %4 = vector.broadcast %3 : vector<1x128xf32> to vector<16x128xf32>
    %5 = arith.addf %2, %4 : vector<16x128xf32>
    %cst_5 = arith.constant 0.000000e+00 : f32
    %6 = vector.broadcast %cst_5 : f32 to vector<16x128xf32>
    %7 = arith.maximumf %5, %6 : vector<16x128xf32>
    %c0_6 = arith.constant 0 : index
    %c0_7 = arith.constant 0 : index
    %8 = vector.load %arg4[%c0_6, %c0_7] : memref<128x128xf32, #tpu.memory_space<vmem>>, vector<128x128xf32>
    %cst_8 = arith.constant dense<0.000000e+00> : vector<16x128xf32>
    %9 = tpu.matmul %7, %8, %cst_8 {dimension_numbers = #tpu.dot_dimension_numbers<[1], [0], [0], [1], [0, 0, 1, 1], [], []>} : vector<16x128xf32>, vector<128x128xf32>, vector<16x128xf32> -> vector<16x128xf32>
    %c0_9 = arith.constant 0 : index
    %c0_10 = arith.constant 0 : index
    %10 = vector.load %arg5[%c0_9, %c0_10] : memref<1x128xf32, #tpu.memory_space<vmem>>, vector<1x128xf32>
    %11 = vector.broadcast %10 : vector<1x128xf32> to vector<16x128xf32>
    %12 = arith.addf %9, %11 : vector<16x128xf32>
    %cst_11 = arith.constant 0.000000e+00 : f32
    %13 = vector.broadcast %cst_11 : f32 to vector<16x128xf32>
    %14 = arith.maximumf %12, %13 : vector<16x128xf32>
    %c0_12 = arith.constant 0 : index
    %c0_13 = arith.constant 0 : index
    %15 = vector.load %arg6[%c0_12, %c0_13] : memref<128x128xf32, #tpu.memory_space<vmem>>, vector<128x128xf32>
    %cst_14 = arith.constant dense<0.000000e+00> : vector<16x128xf32>
    %16 = tpu.matmul %14, %15, %cst_14 {dimension_numbers = #tpu.dot_dimension_numbers<[1], [0], [0], [1], [0, 0, 1, 1], [], []>} : vector<16x128xf32>, vector<128x128xf32>, vector<16x128xf32> -> vector<16x128xf32>
    %c0_15 = arith.constant 0 : index
    %c0_16 = arith.constant 0 : index
    %17 = vector.load %arg7[%c0_15, %c0_16] : memref<1x128xf32, #tpu.memory_space<vmem>>, vector<1x128xf32>
    %18 = vector.broadcast %17 : vector<1x128xf32> to vector<16x128xf32>
    %19 = arith.addf %16, %18 : vector<16x128xf32>
    %cst_17 = arith.constant 0.000000e+00 : f32
    %20 = vector.broadcast %cst_17 : f32 to vector<16x128xf32>
    %21 = arith.maximumf %19, %20 : vector<16x128xf32>
    %c0_18 = arith.constant 0 : index
    %c0_19 = arith.constant 0 : index
    %22 = vector.load %arg8[%c0_18, %c0_19] : memref<16x128xf32, #tpu.memory_space<vmem>>, vector<16x128xf32>
    tpu.vector_store %arg8[%c0_18, %c0_19], %21 {strides = array<i32>} : memref<16x128xf32, #tpu.memory_space<vmem>>, vector<16x128xf32>,
    return
  }
  func.func @transform_0(%arg0: i32) -> (i32, i32) {
    %c0_i32 = arith.constant 0 : i32
    %c0_i32_0 = arith.constant 0 : i32
    return %arg0, %c0_i32 : i32, i32
  }
  func.func @transform_1(%arg0: i32) -> (i32, i32) {
    %c0_i32 = arith.constant 0 : i32
    %c0_i32_0 = arith.constant 0 : i32
    %c0_i32_1 = arith.constant 0 : i32
    return %c0_i32, %c0_i32_0 : i32, i32
  }
  func.func @transform_2(%arg0: i32) -> (i32, i32) {
    %c0_i32 = arith.constant 0 : i32
    %c0_i32_0 = arith.constant 0 : i32
    %c0_i32_1 = arith.constant 0 : i32
    return %c0_i32, %c0_i32_0 : i32, i32
  }
  func.func @transform_3(%arg0: i32) -> (i32, i32) {
    %c0_i32 = arith.constant 0 : i32
    %c0_i32_0 = arith.constant 0 : i32
    %c0_i32_1 = arith.constant 0 : i32
    return %c0_i32, %c0_i32_0 : i32, i32
  }
  func.func @transform_4(%arg0: i32) -> (i32, i32) {
    %c0_i32 = arith.constant 0 : i32
    %c0_i32_0 = arith.constant 0 : i32
    %c0_i32_1 = arith.constant 0 : i32
    return %c0_i32, %c0_i32_0 : i32, i32
  }
  func.func @transform_5(%arg0: i32) -> (i32, i32) {
    %c0_i32 = arith.constant 0 : i32
    %c0_i32_0 = arith.constant 0 : i32
    %c0_i32_1 = arith.constant 0 : i32
    return %c0_i32, %c0_i32_0 : i32, i32
  }
  func.func @transform_6(%arg0: i32) -> (i32, i32) {
    %c0_i32 = arith.constant 0 : i32
    %c0_i32_0 = arith.constant 0 : i32
    %c0_i32_1 = arith.constant 0 : i32
    return %c0_i32, %c0_i32_0 : i32, i32
  }
  func.func @transform_7(%arg0: i32) -> (i32, i32) {
    %c0_i32 = arith.constant 0 : i32
    %c0_i32_0 = arith.constant 0 : i32
    return %arg0, %c0_i32 : i32, i32
  }
}

</mosaic_0001>

<bundles_post_ra>
// kernel: tpu_custom_call.1
= control target key start
LH: loop header
LB: loop body
LE: loop exit
PB: predicated region body
PF: predicated region fallthrough
CT: control target
= control target key end

     0   :  { %12 = vsyncpa [#allocation3], 0  ;;  %s747_s0 = inlined_call_operand.hbm [shape: f32[16,64], index: 0, kind: input, shape index: {}]   ;;  %s748_s1 = inlined_call_operand.hbm [shape: f32[64,128], index: 1, kind: input, shape index: {}]   ;;  %s749_s2 = inlined_call_operand.vmem [shape: f32[1,128], index: 2, kind: input, shape index: {}]   ;;  %s750_s3 = inlined_call_operand.hbm [shape: f32[128,128], index: 3, kind: input, shape index: {}]   ;;  %s751_s4 = inlined_call_operand.vmem [shape: f32[1,128], index: 4, kind: input, shape index: {}]   ;;  %s752_s5 = inlined_call_operand.hbm [shape: f32[128,128], index: 5, kind: input, shape index: {}]   ;;  %s753_s6 = inlined_call_operand.vmem [shape: f32[1,128], index: 6, kind: input, shape index: {}]   ;;  %s754_s7 = inlined_call_operand.hbm [shape: f32[16,128], index: 7, kind: output, shape index: {}]  }
   0x1   :  { %13 = vsyncpa [#allocation6], 0 }
   0x2   :  { %14 = vsyncpa [#allocation9], 0 }
   0x3   :  { %15 = vsyncpa [#allocation4], 0  ;;  %s659_s24 = smov [#allocation5]   ;;  %s660_s26 = smov [#allocation2]  }
   0x4   :  { %s33_s25 = sshll.u32 %s659_s24, 4  ;;  %s21_s27 = sshll.u32 %s660_s26, 4  ;;  %s34_s25 = int_to_ptr.vmem [resolvable:$true] %s33_s25  ;;  %s22_s27 = int_to_ptr.vmem [resolvable:$true] %s21_s27 }
   0x5   :  { %s559_s28 = scalar_lea.vmem %s34_s25, 1024  ;;  %p564_p1 = scmp.lt.s32.totalorder %s34_s25, %s34_s25 }
   0x6   :  { %p560_p0 = scmp.ne.s32.totalorder %s34_s25, %s559_s28  ;;  %p565_p2 = scmp.lt.s32.totalorder %s559_s28, %s559_s28 }
   0x8   :  { %p566_p3 = por %p565_p2, %p564_p1 }
   0xa   :  { %p567_p4 = pnand %p566_p3, %p560_p0 }
   0xc   :  { %570 = shalt.err (!%p567_p4)
}
   0xd   :  { %s661_s29 = smov 128   ;;  %s662_s30 = smov 8  }
   0xe   :  { %39 = dma.hbm_to_vmem [thread:$0]  %s748_s1, 1024, %s34_s25, [#allocation6], %s661_s29, %s661_s29, %s662_s30  }
   0xf   :  { %s579_s10 = scalar_lea.vmem %s22_s27, 256  ;;  %p584_p6 = scmp.lt.s32.totalorder %s22_s27, %s22_s27 }
  0x10   :  { %p580_p5 = scmp.ne.s32.totalorder %s22_s27, %s579_s10  ;;  %p585_p7 = scmp.lt.s32.totalorder %s579_s10, %s579_s10 }
  0x12   :  { %p586_p8 = por %p585_p7, %p584_p6 }
  0x14   :  { %p587_p9 = pnand %p586_p8, %p580_p5 }
  0x16   :  { %590 = shalt.err (!%p587_p9)
}
  0x17   :  { %27 = dma.hbm_to_vmem [thread:$0]  %s747_s0, 256, %s22_s27, [#allocation3], %s661_s29, %s661_s29, %s662_s30  }
  0x18   :  { %s663_s13 = smov [#allocation7]   ;;  %s664_s15 = smov [#allocation8]  }
  0x19   :  { %s47_s14 = sshll.u32 %s663_s13, 4  ;;  %s61_s16 = sshll.u32 %s664_s15, 4  ;;  %s48_s14 = int_to_ptr.vmem [resolvable:$true] %s47_s14  ;;  %s62_s16 = int_to_ptr.vmem [resolvable:$true] %s61_s16 }
  0x1a   :  { %s599_s1 = scalar_lea.vmem %s48_s14, 2048  ;;  %p604_p11 = scmp.lt.s32.totalorder %s48_s14, %s48_s14 }
  0x1b   :  { %p600_p10 = scmp.ne.s32.totalorder %s48_s14, %s599_s1  ;;  %p605_p12 = scmp.lt.s32.totalorder %s599_s1, %s599_s1 }
  0x1d   :  { %p606_p13 = por %p605_p12, %p604_p11 }
  0x1f   :  { %p607_p0 = pnand %p606_p13, %p600_p10 }
  0x21   :  { %610 = shalt.err (!%p607_p0)
}
  0x22   :  { %53 = dma.hbm_to_vmem [thread:$0]  %s750_s3, 2048, %s48_s14, [#allocation6], %s661_s29, %s661_s29, %s662_s30  }
  0x23   :  { %s619_s0 = scalar_lea.vmem %s62_s16, 2048  ;;  %p624_p2 = scmp.lt.s32.totalorder %s62_s16, %s62_s16 }
  0x24   :  { %p620_p1 = scmp.ne.s32.totalorder %s62_s16, %s619_s0  ;;  %p625_p3 = scmp.lt.s32.totalorder %s619_s0, %s619_s0 }
  0x26   :  { %p626_p4 = por %p625_p3, %p624_p2 }
  0x28   :  { %p627_p5 = pnand %p626_p4, %p620_p1 }
  0x2a   :  { %630 = shalt.err (!%p627_p5)
}
  0x2b   :  { %67 = dma.hbm_to_vmem [thread:$0]  %s752_s5, 2048, %s62_s16, [#allocation9], %s661_s29, %s661_s29, %s662_s30  }
  0x2c   :  { %651 = dma.done.wait [#allocation3], 256  }
  0x2d   :  { %652 = vsyncadd [#allocation3], 4294967040 }
  0x2e   :  { %653 = dma.done.wait [#allocation6], 3072  }
  0x2f   :  { %654 = vsyncadd [#allocation6], 4294964224 }
  0x30   :  { %655 = dma.done.wait [#allocation9], 2048  }
  0x31   :  { %656 = vsyncadd [#allocation9], 4294965248  ;;  %v91_v0 = vld [vmem:[#allocation5 + $0x38] sm:$0xff]  ;;  %v90_v1 = vld [vmem:[#allocation5 + $0x30] sm:$0xff]  ;;  %vm99_vm0 = vcmask 523264   ;;  %s665_s24 = smov [#allocation10]  }
  0x32   :  { %455 = vmatprep.subr.mxu0 %v91_v0  ;;  %v89_v2 = vld [vmem:[#allocation5 + $0x28] sm:$0xff]  ;;  %v82_v3 = vld [vmem:[#allocation2] sm:$0xff]  ;;  %v198_v4 = vld [vmem:[#allocation7 + $0x78] sm:$0xff]  ;;  %s390_s25 = sshll.u32 %s665_s24, 4  ;;  %s391_s25 = int_to_ptr.vmem [resolvable:$true] %s390_s25 }
  0x33   :  { %456 = vmatpush3.msra.mxu0 %v91_v0  ;;  %471 = vmatprep.mubr.msk.f32.mxu0 %vm99_vm0, %v82_v3  ;;  %v197_v5 = vld [vmem:[#allocation7 + $0x70] sm:$0xff]  ;;  %v88_v6 = vld [vmem:[#allocation5 + $0x20] sm:$0xff]  ;;  %v196_v7 = vld [vmem:[#allocation7 + $0x68] sm:$0xff]  ;;  %p636_p7 = scmp.lt.s32.totalorder %s391_s25, %s391_s25 }
  0x34   :  { %457 = vmatprep.subr.mxu0 %v90_v1  ;;  %474 = vmatprep.subr.mxu1 %v198_v4  ;;  %v87_v8 = vld [vmem:[#allocation5 + $0x18] sm:$0xff]  ;;  %v195_v9 = vld [vmem:[#allocation7 + $0x60] sm:$0xff]  ;;  %v86_v10 = vld [vmem:[#allocation5 + $0x10] sm:$0xff] }
  0x35   :  { %458 = vmatpush3.msra.mxu0 %v90_v1  ;;  %475 = vmatpush3.msra.mxu1 %v198_v4  ;;  %v194_v11 = vld [vmem:[#allocation7 + $0x58] sm:$0xff]  ;;  %v85_v12 = vld [vmem:[#allocation5 + $0x8] sm:$0xff]  ;;  %v193_v13 = vld [vmem:[#allocation7 + $0x50] sm:$0xff] }
  0x36   :  { %459 = vmatprep.subr.mxu0 %v89_v2  ;;  %476 = vmatprep.subr.mxu1 %v197_v5  ;;  %v84_v14 = vld [vmem:[#allocation5] sm:$0xff]  ;;  %v192_v15 = vld [vmem:[#allocation7 + $0x48] sm:$0xff]  ;;  %v83_v16 = vld [vmem:[#allocation2 + $0x8] sm:$0xff] }
  0x37   :  { %460 = vmatpush3.msra.mxu0 %v89_v2  ;;  %477 = vmatpush3.msra.mxu1 %v197_v5  ;;  %v191_v17 = vld [vmem:[#allocation7 + $0x40] sm:$0xff]  ;;  %v190_v18 = vld [vmem:[#allocation7 + $0x38] sm:$0xff]  ;;  %v189_v19 = vld [vmem:[#allocation7 + $0x30] sm:$0xff] }
  0x38   :  { %461 = vmatprep.subr.mxu0 %v88_v6  ;;  %478 = vmatprep.subr.mxu1 %v196_v7  ;;  %v188_v20 = vld [vmem:[#allocation7 + $0x28] sm:$0xff]  ;;  %v187_v21 = vld [vmem:[#allocation7 + $0x20] sm:$0xff]  ;;  %v186_v22 = vld [vmem:[#allocation7 + $0x18] sm:$0xff] }
  0x39   :  { %462 = vmatpush3.msra.mxu0 %v88_v6  ;;  %479 = vmatpush3.msra.mxu1 %v196_v7  ;;  %v185_v23 = vld [vmem:[#allocation7 + $0x10] sm:$0xff]  ;;  %v184_v24 = vld [vmem:[#allocation7 + $0x8] sm:$0xff]  ;;  %v183_v25 = vld [vmem:[#allocation7] sm:$0xff] }
  0x3a   :  { %463 = vmatprep.subr.mxu0 %v87_v8  ;;  %480 = vmatprep.subr.mxu1 %v195_v9  ;;  %v298_v26 = vld [vmem:[#allocation8 + $0x78] sm:$0xff]  ;;  %v297_v27 = vld [vmem:[#allocation8 + $0x70] sm:$0xff]  ;;  %v296_v28 = vld [vmem:[#allocation8 + $0x68] sm:$0xff] }
  0x3b   :  { %464 = vmatpush3.msra.mxu0 %v87_v8  ;;  %481 = vmatpush3.msra.mxu1 %v195_v9  ;;  %v295_v29 = vld [vmem:[#allocation8 + $0x60] sm:$0xff]  ;;  %v294_v30 = vld [vmem:[#allocation8 + $0x58] sm:$0xff]  ;;  %v293_v31 = vld [vmem:[#allocation8 + $0x50] sm:$0xff] }
  0x3c   :  { %465 = vmatprep.subr.mxu0 %v86_v10  ;;  %482 = vmatprep.subr.mxu1 %v194_v11  ;;  %v292_v32 = vld [vmem:[#allocation8 + $0x48] sm:$0xff]  ;;  %v291_v33 = vld [vmem:[#allocation8 + $0x40] sm:$0xff]  ;;  %v290_v34 = vld [vmem:[#allocation8 + $0x38] sm:$0xff] }
  0x3d   :  { %466 = vmatpush3.msra.mxu0 %v86_v10  ;;  %483 = vmatpush3.msra.mxu1 %v194_v11  ;;  %v289_v35 = vld [vmem:[#allocation8 + $0x30] sm:$0xff]  ;;  %v288_v36 = vld [vmem:[#allocation8 + $0x28] sm:$0xff]  ;;  %v287_v37 = vld [vmem:[#allocation8 + $0x20] sm:$0xff] }
  0x3e   :  { %467 = vmatprep.subr.mxu0 %v85_v12  ;;  %484 = vmatprep.subr.mxu1 %v193_v13  ;;  %v404_v38 = vld [vmem:[%s749_s2] ss:$0 sm:$0xff]  ;;  %v286_v45 = vld [vmem:[#allocation8 + $0x18] sm:$0xff]  ;;  %v284_v47 = vld [vmem:[#allocation8 + $0x8] sm:$0xff] }
  0x3f   :  { %468 = vmatpush3.msra.mxu0 %v85_v12  ;;  %485 = vmatpush3.msra.mxu1 %v193_v13  ;;  %v285_v46 = vld [vmem:[#allocation8 + $0x10] sm:$0xff]  ;;  %v283_v48 = vld [vmem:[#allocation8] sm:$0xff] }
  0x40   :  { %469 = vmatprep.subr.mxu0 %v84_v14  ;;  %486 = vmatprep.subr.mxu1 %v192_v15  ;;  %v407_v49 = vld [vmem:[%s751_s4] ss:$0 sm:$0xff]  ;;  %s631_s4 = scalar_lea.vmem %s391_s25, 256 }
  0x41   :  { %470 = vmatpush3.msra.mxu0 %v84_v14  ;;  %487 = vmatpush3.msra.mxu1 %v192_v15  ;;  %v408_v56 = vld [vmem:[%s753_s6] ss:$0 sm:$0xff]  ;;  %p632_p6 = scmp.ne.s32.totalorder %s391_s25, %s631_s4  ;;  %p637_p8 = scmp.lt.s32.totalorder %s631_s4, %s631_s4 }
  0x42   :  { %472 = vmatmul.mubr.msk.f32.vlgmr.msra.gmra.mxu0 %vm99_vm0, %v83_v16  ;;  %488 = vmatprep.subr.mxu1 %v191_v17 }
  0x43   :  { %489 = vmatpush3.msra.mxu1 %v191_v17  ;;  %509 = vmatprep.subr.mxu0 %v298_v26  ;;  %p638_p9 = por %p637_p8, %p636_p7 }
  0x44   :  { %490 = vmatprep.subr.mxu1 %v190_v18  ;;  %510 = vmatpush3.msra.mxu0 %v298_v26 }
  0x45   :  { %491 = vmatpush3.msra.mxu1 %v190_v18  ;;  %511 = vmatprep.subr.mxu0 %v297_v27  ;;  %p639_p10 = pnand %p638_p9, %p632_p6 }
  0x46   :  { %492 = vmatprep.subr.mxu1 %v189_v19  ;;  %512 = vmatpush3.msra.mxu0 %v297_v27 }
  0x47   :  { %493 = vmatpush3.msra.mxu1 %v189_v19  ;;  %513 = vmatprep.subr.mxu0 %v296_v28 }
  0x48   :  { %494 = vmatprep.subr.mxu1 %v188_v20  ;;  %514 = vmatpush3.msra.mxu0 %v296_v28 }
  0x49   :  { %495 = vmatpush3.msra.mxu1 %v188_v20  ;;  %515 = vmatprep.subr.mxu0 %v295_v29 }
  0x4a   :  { %496 = vmatprep.subr.mxu1 %v187_v21  ;;  %516 = vmatpush3.msra.mxu0 %v295_v29 }
  0x4b   :  { %497 = vmatpush3.msra.mxu1 %v187_v21  ;;  %517 = vmatprep.subr.mxu0 %v294_v30 }
  0x4c   :  { %498 = vmatprep.subr.mxu1 %v186_v22  ;;  %518 = vmatpush3.msra.mxu0 %v294_v30 }
  0x4d   :  { %499 = vmatpush3.msra.mxu1 %v186_v22  ;;  %519 = vmatprep.subr.mxu0 %v293_v31 }
  0x4e   :  { %500 = vmatprep.subr.mxu1 %v185_v23  ;;  %520 = vmatpush3.msra.mxu0 %v293_v31 }
  0x4f   :  { %501 = vmatpush3.msra.mxu1 %v185_v23  ;;  %521 = vmatprep.subr.mxu0 %v292_v32 }
  0x50   :  { %502 = vmatprep.subr.mxu1 %v184_v24  ;;  %522 = vmatpush3.msra.mxu0 %v292_v32 }
  0x51   :  { %503 = vmatpush3.msra.mxu1 %v184_v24  ;;  %523 = vmatprep.subr.mxu0 %v291_v33 }
  0x52   :  { %504 = vmatprep.subr.mxu1 %v183_v25  ;;  %524 = vmatpush3.msra.mxu0 %v291_v33 }
  0x53   :  { %505 = vmatpush3.msra.mxu1 %v183_v25  ;;  %525 = vmatprep.subr.mxu0 %v290_v34 }
  0x54   :  { %526 = vmatpush3.msra.mxu0 %v290_v34 }
  0x55   :  { %527 = vmatprep.subr.mxu0 %v289_v35 }
  0x56   :  { %528 = vmatpush3.msra.mxu0 %v289_v35 }
  0x57   :  { %529 = vmatprep.subr.mxu0 %v288_v36 }
  0x58   :  { %530 = vmatpush3.msra.mxu0 %v288_v36 }
  0x59   :  { %531 = vmatprep.subr.mxu0 %v287_v37 }
  0x5a   :  { %532 = vmatpush3.msra.mxu0 %v287_v37 }
  0x5b   :  { %533 = vmatprep.subr.mxu0 %v286_v45 }
  0x5c   :  { %534 = vmatpush3.msra.mxu0 %v286_v45 }
  0x5d   :  { %535 = vmatprep.subr.mxu0 %v285_v46 }
  0x5e   :  { %536 = vmatpush3.msra.mxu0 %v285_v46 }
  0x5f   :  { %537 = vmatprep.subr.mxu0 %v284_v47 }
  0x60   :  { %538 = vmatpush3.msra.mxu0 %v284_v47 }
  0x61   :  { %539 = vmatprep.subr.mxu0 %v283_v48 }
  0x62   :  { %540 = vmatpush3.msra.mxu0 %v283_v48 }
 0x102   :  { %v473_v39 = vpop.f32.mrf.mxu0 }
 0x103   :  { %v178_v40 = vadd.f32 %v473_v39, %v404_v38 }
 0x104   :  { %v172_v41 = vpop.f32.mrf.mxu0 }
 0x105   :  { %v173_v42 = vadd.f32 %v404_v38, %v172_v41  ;;  %v182_v44 = vmax.f32 %v178_v40, 0.0 }
 0x107   :  { %v181_v43 = vmax.f32 %v173_v42, 0.0 }
 0x109   :  { %506 = vmatprep.mubr.f32.mxu1 %v181_v43 }
 0x10a   :  { %507 = vmatmul.mubr.f32.vlgmr.msra.gmra.mxu1 %v182_v44 }
 0x1ca   :  { %v508_v50 = vpop.f32.mrf.mxu1 }
 0x1cb   :  { %v278_v51 = vadd.f32 %v508_v50, %v407_v49 }
 0x1cc   :  { %v272_v52 = vpop.f32.mrf.mxu1 }
 0x1cd   :  { %v273_v53 = vadd.f32 %v407_v49, %v272_v52  ;;  %v282_v55 = vmax.f32 %v278_v51, 0.0 }
 0x1cf   :  { %v281_v54 = vmax.f32 %v273_v53, 0.0 }
 0x1d1   :  { %541 = vmatprep.mubr.f32.mxu0 %v281_v54 }
 0x1d2   :  { %542 = vmatmul.mubr.f32.vlgmr.msra.gmra.mxu0 %v282_v55 }
 0x292   :  { %v543_v57 = vpop.f32.mrf.mxu0 }
 0x293   :  { %v378_v58 = vadd.f32 %v543_v57, %v408_v56 }
 0x294   :  { %v372_v59 = vpop.f32.mrf.mxu0 }
 0x295   :  { %v382_v60 = vmax.f32 %v378_v58, 0.0  ;;  %v373_v61 = vadd.f32 %v408_v56, %v372_v59 }
 0x297   :  { %384 = vst [vmem:[#allocation10 + $0x8] sm:$0xff] %v382_v60  ;;  %v381_v62 = vmax.f32 %v373_v61, 0.0 }
 0x299   :  { %383 = vst [vmem:[#allocation10] sm:$0xff] %v381_v62 }
 0x29a   :  { %642 = shalt.err (!%p639_p10)
}
 0x29b   :  { %396 = dma.vmem_to_hbm [thread:$0]  %s391_s25, 256, %s754_s7, [#allocation4], %s661_s29, %s661_s29, %s662_s30  }
 0x29c   :  { %657 = dma.done.wait [#allocation4], 256  }
 0x29d   :  { %658 = vsyncadd [#allocation4], 4294967040 }
 0x29e   :  { %400 = vsyncpa [#allocation3], 1 }
 0x29f   :  { %401 = vsyncpa [#allocation6], 1 }
 0x2a0   :  { %402 = vsyncpa [#allocation9], 1 }
 0x2a1   :  { %403 = vsyncpa [#allocation4], 1 }

</bundles_post_ra>
